<compile_context>
chip_gen: v7x
topology: tpu7x:2x2x1
jax: 0.10.0
libtpu: 0.0.40
codegen_flags: <defaults>
</compile_context>

<pallas_src>
import jax
import jax.numpy as jnp
from jax.experimental import pallas as pl
from jax.experimental.pallas import tpu as pltpu


def _round_up(x, m):
    return (x + m - 1) // m * m


def _cdiv(a, b):
    return (a + b - 1) // b


def _mlp_kernel(x_ref, w1_ref, b1_ref, w2_ref, b2_ref, out_ref):
    # fc1 on the MXU: bf16 operands, f32 accumulation.
    h = jnp.dot(x_ref[...].astype(jnp.bfloat16), w1_ref[...],
                preferred_element_type=jnp.float32)
    # Bias add + ReLU in f32 on the VPU.
    h = jnp.maximum(h + b1_ref[...], 0.0)
    # fc2 on the MXU: bf16 operands, f32 accumulation, narrow (8-wide) output.
    o = jnp.dot(h.astype(jnp.bfloat16), w2_ref[...],
                preferred_element_type=jnp.float32)
    out_ref[...] = (o + b2_ref[...]).astype(out_ref.dtype)


def mushroom_classifier_forward(x, w1, b1, w2, b2, *, block_b=2048):
    """Fused MLP forward.

    Args:
      x:  (B, D_in)  float32
      w1: (D_in, H)  float32   (transposed vs. PyTorch's (H, D_in))
      b1: (H,)       float32
      w2: (H, D_out) float32   (transposed vs. PyTorch's (D_out, H))
      b2: (D_out,)   float32
    Returns:
      (B, D_out) float32
    """
    B, D_in = x.shape
    H = w1.shape[1]
    D_out = w2.shape[1]

    ALIGN = 16  # sublane-tile multiple safe for both bf16 (16,128) and f32 (8,128)

    # Hidden dim stays lane-dense (128); output dim only padded to a sublane
    # multiple (8) to keep the writeback footprint tiny.
    H_pad = _round_up(max(H, 128), 128)
    DO_pad = _round_up(max(D_out, 8), 8)

    # --- Batch tiling -------------------------------------------------------
    # Align batch to 16 rows only (not to a whole tile), then pick the number
    # of grid steps: >= 2 for non-tiny batches so v7x's 2 TensorCores split
    # the "parallel" axis, more steps for very large batches (tile <= block_b).
    B_aln = _round_up(B, ALIGN)
    if B_aln >= 256:
        n_steps = max(2, _cdiv(B_aln, block_b))
    else:
        n_steps = 1
    TB = _round_up(_cdiv(B_aln, n_steps), ALIGN)
    B_pad = n_steps * TB

    # --- Operand padding ----------------------------------------------------
    if B_pad == B:
        # No pad needed: avoid an extra HBM round trip, cast to bf16 in-kernel.
        x_p = x
    else:
        # A pad/copy is required anyway; fold the bf16 cast into it so the
        # kernel reads 2 B/elem instead of 4.
        x_p = jnp.zeros((B_pad, D_in), jnp.bfloat16).at[:B].set(
            x.astype(jnp.bfloat16))

    w1_p = jnp.zeros((D_in, H_pad), jnp.bfloat16).at[:, :H].set(
        w1.astype(jnp.bfloat16))
    b1_p = jnp.zeros((1, H_pad), jnp.float32).at[0, :H].set(
        b1.astype(jnp.float32))
    w2_p = jnp.zeros((H_pad, DO_pad), jnp.bfloat16).at[:H, :D_out].set(
        w2.astype(jnp.bfloat16))
    b2_p = jnp.zeros((1, DO_pad), jnp.float32).at[0, :D_out].set(
        b2.astype(jnp.float32))

    out_pad = pl.pallas_call(
        _mlp_kernel,
        out_shape=jax.ShapeDtypeStruct((B_pad, DO_pad), jnp.float32),
        grid=(n_steps,),
        in_specs=[
            pl.BlockSpec((TB, D_in), lambda i: (i, 0)),        # x: batch-tiled
            pl.BlockSpec((D_in, H_pad), lambda i: (0, 0)),     # w1: resident
            pl.BlockSpec((1, H_pad), lambda i: (0, 0)),        # b1: resident
            pl.BlockSpec((H_pad, DO_pad), lambda i: (0, 0)),   # w2: resident
            pl.BlockSpec((1, DO_pad), lambda i: (0, 0)),       # b2: resident
        ],
        out_specs=pl.BlockSpec((TB, DO_pad), lambda i: (i, 0)),
        compiler_params=pltpu.CompilerParams(
            dimension_semantics=("parallel",),
        ),
    )(x_p, w1_p, b1_p, w2_p, b2_p)

    # Padded rows carry garbage (relu(b1) @ w2 + b2); always slice them off.
    return out_pad[:B, :D_out]


def _reference_f32(x, w1, b1, w2, b2):
    h = jnp.maximum(x @ w1 + b1, 0.0)
    return h @ w2 + b2


def _reference_bf16(x, w1, b1, w2, b2):
    # Mirrors the kernel's numerics: bf16 matmul operands, f32 accumulation,
    # bias/ReLU in f32.
    h = jnp.dot(x.astype(jnp.bfloat16), w1.astype(jnp.bfloat16),
                preferred_element_type=jnp.float32) + b1
    h = jnp.maximum(h, 0.0)
    return jnp.dot(h.astype(jnp.bfloat16), w2.astype(jnp.bfloat16),
                   preferred_element_type=jnp.float32) + b2


if __name__ == "__main__":
    # Small shapes consistent with the module: mushroom features -> hidden -> classes.
    batch = 8
    input_dim = 32
    hidden_dim = 64
    output_dim = 2

    key = jax.random.PRNGKey(0)
    kx, kw1, kb1, kw2, kb2, kx2 = jax.random.split(key, 6)

    x = jax.random.normal(kx, (batch, input_dim), dtype=jnp.float32)

    # Deterministic init, mimicking nn.Linear's uniform(-1/sqrt(fan_in), ...).
    bound1 = 1.0 / jnp.sqrt(input_dim)
    w1 = jax.random.uniform(kw1, (input_dim, hidden_dim), dtype=jnp.float32,
                            minval=-bound1, maxval=bound1)
    b1 = jax.random.uniform(kb1, (hidden_dim,), dtype=jnp.float32,
                            minval=-bound1, maxval=bound1)

    bound2 = 1.0 / jnp.sqrt(hidden_dim)
    w2 = jax.random.uniform(kw2, (hidden_dim, output_dim), dtype=jnp.float32,
                            minval=-bound2, maxval=bound2)
    b2 = jax.random.uniform(kb2, (output_dim,), dtype=jnp.float32,
                            minval=-bound2, maxval=bound2)

    # --- Small-batch path (single grid step) ---
    out = mushroom_classifier_forward(x, w1, b1, w2, b2)
    out = jax.block_until_ready(out)
    assert out.shape == (batch, output_dim)
    assert jnp.allclose(out, _reference_bf16(x, w1, b1, w2, b2),
                        atol=1e-2, rtol=1e-2)
    assert jnp.allclose(out, _reference_f32(x, w1, b1, w2, b2),
                        atol=1e-1, rtol=1e-1)

    # --- Larger-batch path (2 grid steps + ragged batch padding) ---
    big_batch = 1037
    xb = jax.random.normal(kx2, (big_batch, input_dim), dtype=jnp.float32)
    out_b = mushroom_classifier_forward(xb, w1, b1, w2, b2)
    out_b = jax.block_until_ready(out_b)
    assert out_b.shape == (big_batch, output_dim)
    assert jnp.allclose(out_b, _reference_bf16(xb, w1, b1, w2, b2),
                        atol=1e-2, rtol=1e-2)
    assert jnp.allclose(out_b, _reference_f32(xb, w1, b1, w2, b2),
                        atol=1e-1, rtol=1e-1)

    print("KERNEL_OK")
</pallas_src>

<mosaic_0001>
module attributes {stable_mosaic.version = 11 : i64} {
  func.func @_mlp_kernel(%arg0: i32, %arg1: memref<16x32xbf16, #tpu.memory_space<vmem>>, %arg2: memref<32x128xbf16, #tpu.memory_space<vmem>>, %arg3: memref<1x128xf32, #tpu.memory_space<vmem>>, %arg4: memref<128x8xbf16, #tpu.memory_space<vmem>>, %arg5: memref<1x8xf32, #tpu.memory_space<vmem>>, %arg6: memref<16x8xf32, #tpu.memory_space<vmem>>) attributes {dimension_semantics = [#tpu.dimension_semantics<parallel>], iteration_bounds = array<i64: 1>, scalar_prefetch = 0 : i64, scratch_operands = 0 : i64, tpu.core_type = #tpu.core_type<tc>, window_params = [{transform_indices = @transform_0, window_bounds = array<i64: 16, 32>}, {pipeline_mode = #tpu.pipeline_mode<synchronous>, transform_indices = @transform_1, window_bounds = array<i64: 32, 128>}, {pipeline_mode = #tpu.pipeline_mode<synchronous>, transform_indices = @transform_2, window_bounds = array<i64: 1, 128>}, {pipeline_mode = #tpu.pipeline_mode<synchronous>, transform_indices = @transform_3, window_bounds = array<i64: 128, 8>}, {pipeline_mode = #tpu.pipeline_mode<synchronous>, transform_indices = @transform_4, window_bounds = array<i64: 1, 8>}, {transform_indices = @transform_5, window_bounds = array<i64: 16, 8>}]} {
    %c0 = arith.constant 0 : index
    %c0_0 = arith.constant 0 : index
    %0 = vector.load %arg1[%c0, %c0_0] : memref<16x32xbf16, #tpu.memory_space<vmem>>, vector<16x32xbf16>
    %c0_1 = arith.constant 0 : index
    %c0_2 = arith.constant 0 : index
    %1 = vector.load %arg2[%c0_1, %c0_2] : memref<32x128xbf16, #tpu.memory_space<vmem>>, vector<32x128xbf16>
    %cst = arith.constant dense<0.000000e+00> : vector<16x128xf32>
    %2 = tpu.matmul %0, %1, %cst {dimension_numbers = #tpu.dot_dimension_numbers<[1], [0], [0], [1], [0, 0, 1, 1], [], []>} : vector<16x32xbf16>, vector<32x128xbf16>, vector<16x128xf32> -> vector<16x128xf32>
    %c0_3 = arith.constant 0 : index
    %c0_4 = arith.constant 0 : index
    %3 = vector.load %arg3[%c0_3, %c0_4] : memref<1x128xf32, #tpu.memory_space<vmem>>, vector<1x128xf32>
    %4 = vector.broadcast %3 : vector<1x128xf32> to vector<16x128xf32>
    %5 = arith.addf %2, %4 : vector<16x128xf32>
    %cst_5 = arith.constant 0.000000e+00 : f32
    %6 = vector.broadcast %cst_5 : f32 to vector<16x128xf32>
    %7 = arith.maximumf %5, %6 : vector<16x128xf32>
    %8 = arith.truncf %7 : vector<16x128xf32> to vector<16x128xbf16>
    %c0_6 = arith.constant 0 : index
    %c0_7 = arith.constant 0 : index
    %9 = vector.load %arg4[%c0_6, %c0_7] : memref<128x8xbf16, #tpu.memory_space<vmem>>, vector<128x8xbf16>
    %cst_8 = arith.constant dense<0.000000e+00> : vector<16x8xf32>
    %10 = tpu.matmul %8, %9, %cst_8 {dimension_numbers = #tpu.dot_dimension_numbers<[1], [0], [0], [1], [0, 0, 1, 1], [], []>} : vector<16x128xbf16>, vector<128x8xbf16>, vector<16x8xf32> -> vector<16x8xf32>
    %c0_9 = arith.constant 0 : index
    %c0_10 = arith.constant 0 : index
    %11 = vector.load %arg5[%c0_9, %c0_10] : memref<1x8xf32, #tpu.memory_space<vmem>>, vector<1x8xf32>
    %12 = vector.broadcast %11 : vector<1x8xf32> to vector<16x8xf32>
    %13 = arith.addf %10, %12 : vector<16x8xf32>
    %c0_11 = arith.constant 0 : index
    %c0_12 = arith.constant 0 : index
    %14 = vector.load %arg6[%c0_11, %c0_12] : memref<16x8xf32, #tpu.memory_space<vmem>>, vector<16x8xf32>
    tpu.vector_store %arg6[%c0_11, %c0_12], %13 {strides = array<i32>} : memref<16x8xf32, #tpu.memory_space<vmem>>, vector<16x8xf32>,
    return
  }
  func.func @transform_0(%arg0: i32) -> (i32, i32) {
    %c0_i32 = arith.constant 0 : i32
    %c0_i32_0 = arith.constant 0 : i32
    return %arg0, %c0_i32 : i32, i32
  }
  func.func @transform_1(%arg0: i32) -> (i32, i32) {
    %c0_i32 = arith.constant 0 : i32
    %c0_i32_0 = arith.constant 0 : i32
    %c0_i32_1 = arith.constant 0 : i32
    return %c0_i32, %c0_i32_0 : i32, i32
  }
  func.func @transform_2(%arg0: i32) -> (i32, i32) {
    %c0_i32 = arith.constant 0 : i32
    %c0_i32_0 = arith.constant 0 : i32
    %c0_i32_1 = arith.constant 0 : i32
    return %c0_i32, %c0_i32_0 : i32, i32
  }
  func.func @transform_3(%arg0: i32) -> (i32, i32) {
    %c0_i32 = arith.constant 0 : i32
    %c0_i32_0 = arith.constant 0 : i32
    %c0_i32_1 = arith.constant 0 : i32
    return %c0_i32, %c0_i32_0 : i32, i32
  }
  func.func @transform_4(%arg0: i32) -> (i32, i32) {
    %c0_i32 = arith.constant 0 : i32
    %c0_i32_0 = arith.constant 0 : i32
    %c0_i32_1 = arith.constant 0 : i32
    return %c0_i32, %c0_i32_0 : i32, i32
  }
  func.func @transform_5(%arg0: i32) -> (i32, i32) {
    %c0_i32 = arith.constant 0 : i32
    %c0_i32_0 = arith.constant 0 : i32
    return %arg0, %c0_i32 : i32, i32
  }
}

</mosaic_0001>

<bundles_post_ra>
// kernel: tpu_custom_call.1
= control target key start
LH: loop header
LB: loop body
LE: loop exit
PB: predicated region body
PF: predicated region fallthrough
CT: control target
= control target key end

     0   :  { %v285_v0 = vmov 0.0   ;;  %vm286_vm0 = vmmov 0   ;;  %vm51_vm1 = vcmask 261120   ;;  %vm211_vm2 = vcmask 64512   ;;  %s362_s1 = inlined_call_operand.vmem [shape: bf16[32,128], index: 1, kind: input, shape index: {}]   ;;  %s363_s3 = inlined_call_operand.vmem [shape: bf16[128,8], index: 3, kind: input, shape index: {}]   ;;  %s364_s0 = inlined_call_operand.vmem [shape: bf16[16,32], index: 0, kind: input, shape index: {}]   ;;  %s365_s2 = inlined_call_operand.vmem [shape: f32[1,128], index: 2, kind: input, shape index: {}]   ;;  %s366_s4 = inlined_call_operand.vmem [shape: f32[1,8], index: 4, kind: input, shape index: {}]   ;;  %s367_s5 = inlined_call_operand.vmem [shape: f32[16,8], index: 5, kind: output, shape index: {}]  }
   0x1   :  { %244 = vmatprep.subr.bf16.mxu0 %v285_v0  ;;  %v274_v1 = vld [vmem:[%s362_s1] sm:$0xff]   ;;  %248 = vmatprep.mubr.msk.bf16.mxu0 %vm286_vm0, %v285_v0  ;;  %v275_v2 = vld [vmem:[%s362_s1 + $0x8] sm:$0xff]   ;;  %v279_v6 = vld [vmem:[%s363_s3 + $0x10] sm:$0xff]  }
   0x2   :  { %252 = vmatprep.subr.bf16.mxu1 %v285_v0  ;;  %268 = vmatprep.mubr.msk.bf16.mxu1 %vm286_vm0, %v285_v0  ;;  %v277_v3 = vld [vmem:[%s363_s3] sm:$0xff]   ;;  %v278_v5 = vld [vmem:[%s363_s3 + $0x8] sm:$0xff]   ;;  %v280_v7 = vld [vmem:[%s363_s3 + $0x18] sm:$0xff]  }
   0x3   :  { %245 = vmatpush3.bf16.msra.mxu0 %v274_v1  ;;  %v276_v4 = vld [vmem:[%s364_s0] sm:$0xff]   ;;  %253 = vmatpush3.bf16.msra.mxu1 %v277_v3  ;;  %v282_v9 = vld [vmem:[%s363_s3 + $0x28] sm:$0xff]   ;;  %v283_v10 = vld [vmem:[%s363_s3 + $0x30] sm:$0xff]  }
   0x4   :  { %246 = vmatprep.subr.bf16.mxu0 %v285_v0  ;;  %254 = vmatprep.subr.bf16.mxu1 %v285_v0  ;;  %v281_v8 = vld [vmem:[%s363_s3 + $0x20] sm:$0xff]   ;;  %v284_v11 = vld [vmem:[%s363_s3 + $0x38] sm:$0xff]  }
   0x5   :  { %v218_v12 = vld [vmem:[%s365_s2] ss:$0 sm:$0xff] }
   0x6   :  { %v223_v22 = vld [vmem:[%s366_s4] ss:$0 sm:$0xff] }
   0x7   :  { %247 = vmatpush3.bf16.msra.mxu0 %v275_v2  ;;  %255 = vmatpush3.bf16.msra.mxu1 %v278_v5 }
   0x8   :  { %256 = vmatprep.subr.bf16.mxu1 %v285_v0 }
   0xa   :  { %249 = vmatmul.mubr.msk.bf16.vlgmr.msra.gmra.mrb[0].mxu0 %vm51_vm1, %v276_v4 }
   0xb   :  { %257 = vmatpush3.bf16.msra.mxu1 %v279_v6 }
   0xc   :  { %258 = vmatprep.subr.bf16.mxu1 %v285_v0 }
   0xf   :  { %259 = vmatpush3.bf16.msra.mxu1 %v280_v7 }
  0x10   :  { %260 = vmatprep.subr.bf16.mxu1 %v285_v0 }
  0x13   :  { %261 = vmatpush3.bf16.msra.mxu1 %v281_v8 }
  0x14   :  { %262 = vmatprep.subr.bf16.mxu1 %v285_v0 }
  0x17   :  { %263 = vmatpush3.bf16.msra.mxu1 %v282_v9 }
  0x18   :  { %264 = vmatprep.subr.bf16.mxu1 %v285_v0 }
  0x1b   :  { %265 = vmatpush3.bf16.msra.mxu1 %v283_v10 }
  0x1c   :  { %266 = vmatprep.subr.bf16.mxu1 %v285_v0 }
  0x1f   :  { %267 = vmatpush3.bf16.msra.mxu1 %v284_v11 }
  0xdd   :  { %v89_v13 = vpop.f32.mrb[0].mxu0 }
  0xde   :  { %v90_v14 = vadd.f32 %v218_v12, %v89_v13  ;;  %v250_v15 = vpop.f32.mrb[1].mxu0 }
  0xdf   :  { %v92_v16 = vpop.f32.mrb[2].mxu0 }
  0xe0   :  { %v93_v17 = vadd.f32 %v218_v12, %v92_v16  ;;  %v251_v18 = vpop.f32.mrb[3].mxu0  ;;  %v96_v19 = vmax.f32 %v90_v14, 0.0 }
  0xe2   :  { %v97_v20 = vmax.f32 %v93_v17, 0.0 }
  0xe4   :  { %v98_v21 = vpack.c.bf16 %v97_v20, %v96_v19 }
  0xe6   :  { %269 = vmatmul.mubr.bf16.vlgmr.msra.gmra.mrb[0].mxu1 %v98_v21 }
 0x1b9   :  { %v204_v23 = vpop.f32.mrb[0].mxu1 }
 0x1ba   :  { %v205_v24 = vadd.f32 %v223_v22, %v204_v23  ;;  %v270_v25 = vpop.f32.mrb[1].mxu1 }
 0x1bb   :  { %v207_v26 = vpop.f32.mrb[2].mxu1 }
 0x1bc   :  { %212 = vst.msk [vmem:[%s367_s5] sm:$0xff] %vm211_vm2, %v205_v24  ;;  %v208_v27 = vadd.f32 %v223_v22, %v207_v26  ;;  %v271_v28 = vpop.f32.mrb[3].mxu1 }
 0x1be   :  { %213 = vst.msk [vmem:[%s367_s5 + $0x8] sm:$0xff] %vm211_vm2, %v208_v27 }

</bundles_post_ra>
